<compile_context>
chip_gen: v7x
topology: tpu7x:2x2x1
jax: 0.10.0
libtpu: 0.0.40
codegen_flags: <defaults>
</compile_context>

<pallas_src>
import functools

import numpy as np

import jax
import jax.numpy as jnp
from jax.experimental import pallas as pl
from jax.experimental.pallas import tpu as pltpu


# ----------------------------- pltpu.roll convention probe -----------------------------

@functools.lru_cache(maxsize=None)
def _roll_convention():
    """Detect (once) how pltpu.roll rotates relative to jnp.roll on this backend.

    Returns "xlu" (matches jnp.roll), "xlu_neg" (inverted direction), or "concat"
    (portable slice+concat fallback if the probe cannot run).  Correctness of the
    conv kernel never depends on which branch is chosen."""
    def probe(x_ref, o_ref):
        o_ref[...] = pltpu.roll(x_ref[...], 1, axis=1)

    try:
        x = jnp.tile(jnp.arange(128, dtype=jnp.float32)[None, :], (8, 1))
        y = pl.pallas_call(probe, out_shape=jax.ShapeDtypeStruct((8, 128), jnp.float32))(x)
        y0 = float(y[0, 0])
        if y0 == 127.0:
            return "xlu"
        if y0 == 1.0:
            return "xlu_neg"
    except Exception:   # pragma: no cover - defensive (e.g. tracing / lowering issue)
        pass
    return "concat"


# ----------------------------------- Pallas kernel --------------------------------------

def _double_conv_kernel(x_ref, wcol_ref, w1_ref, s1_ref, b1_ref,
                        w2_ref, s2_ref, b2_ref, o_ref,
                        *, H, W, compute_dtype, roll_impl):
    """One grid step = one image, kept as (C, H*W) with H*W on the lane axis."""
    P = H * W

    def roll_lanes(a, shift):
        # jnp.roll(a, shift, axis=-1) semantics; `shift` is a static Python int.
        n = a.shape[-1]
        s = shift % n
        if s == 0:
            return a
        if roll_impl == "xlu":
            return pltpu.roll(a, s, axis=a.ndim - 1)
        if roll_impl == "xlu_neg":          # pltpu.roll rotating the other way
            return pltpu.roll(a, n - s, axis=a.ndim - 1)
        # Portable fallback: two static lane slices (identical result).
        return jnp.concatenate([a[..., n - s:], a[..., :n - s]], axis=-1)

    # Boundary masks on the flat spatial index p = h*W + w (shape (1, P), broadcast over C).
    lane = jax.lax.broadcasted_iota(jnp.int32, (1, P), 1)
    wcol = wcol_ref[...]                        # p % W, precomputed on host
    first_col = wcol == 0                       # w == 0      (circular wrap in heading)
    last_col = wcol == (W - 1)                  # w == W-1    (circular wrap in heading)
    first_row = lane < W                        # h == 0      (replicate in range)
    last_row = lane >= (H - 1) * W              # h == H-1    (replicate in range)

    def im2col(a):
        """a: (C, H*W) row-major.  Returns the radially-padded 3x3 taps as (9*C, H*W).

        Tap order is t = dy*3 + dx (matching the folded weight layout); taps are built
        with lane rotations + boundary selects, never a padded (H+2, W+2) copy."""
        up = jnp.where(first_row, a, roll_lanes(a, W))      # row max(h-1, 0)
        down = jnp.where(last_row, a, roll_lanes(a, -W))    # row min(h+1, H-1)
        taps = []
        for hv in (up, a, down):                            # dy = 0, 1, 2
            left = jnp.where(first_col, roll_lanes(hv, -(W - 1)), roll_lanes(hv, 1))
            right = jnp.where(last_col, roll_lanes(hv, W - 1), roll_lanes(hv, -1))
            taps.extend((left, hv, right))                  # dx = 0, 1, 2
        return jnp.concatenate(taps, axis=0)

    def conv_bn_relu(a, w_ref, s_ref, b_ref):
        col = im2col(a).astype(compute_dtype)               # (9*Cin', P)
        w = w_ref[...].astype(compute_dtype)                # (Cout, 9*Cin')
        # Single MXU matmul per conv; lane-dense (Cout, P) f32 accumulator.
        acc = jnp.dot(w, col, preferred_element_type=jnp.float32)
        # Folded conv-bias + eval-mode BN, then ReLU, all in f32.
        return jnp.maximum(acc * s_ref[...] + b_ref[...], 0.0)

    x = x_ref[0].astype(jnp.float32)             # (Cin, H*W)
    h1 = conv_bn_relu(x, w1_ref, s1_ref, b1_ref)
    h2 = conv_bn_relu(h1, w2_ref, s2_ref, b2_ref)
    o_ref[0] = h2.astype(o_ref.dtype)            # lane-dense store (H*W on lanes)


# ------------------------------------- wrapper ------------------------------------------

def _conv_weight_matrix(w_oihw):
    """(Cout, Cin, 3, 3) -> (Cout, 9*Cin), tap-major: column index = (dy*3+dx)*Cin + c."""
    cout, cin = w_oihw.shape[0], w_oihw.shape[1]
    return jnp.transpose(w_oihw, (0, 2, 3, 1)).reshape(cout, 9 * cin)


def double_conv_pallas(x_nchw, params, *, compute_dtype=jnp.bfloat16):
    """DoubleConv forward.  x_nchw: (N, Cin, H, W) f32 -> (N, Cout, H, W) f32.

    compute_dtype is the MXU operand dtype (bf16 fast path on v6e/v7x, float32 for a
    bit-faithful path); accumulation, BN and ReLU always run in f32."""
    w1, s1, b1, w2, s2, b2 = params
    N, Cin, H, W = x_nchw.shape
    Cout = w1.shape[0]
    P = H * W

    # Free reshapes only -- no HBM transposes on either side of the kernel.
    x_flat = x_nchw.reshape(N, Cin, P)
    w1m = _conv_weight_matrix(w1)                       # (Cout, 9*Cin)
    w2m = _conv_weight_matrix(w2)                       # (Cout, 9*Cout)
    s1c, b1c = s1.reshape(Cout, 1), b1.reshape(Cout, 1)
    s2c, b2c = s2.reshape(Cout, 1), b2.reshape(Cout, 1)
    # Column-within-row index (p % W), precomputed so the kernel needs no vector int div.
    wcol = jnp.asarray((np.arange(P, dtype=np.int32) % W)[None, :])

    kernel = functools.partial(
        _double_conv_kernel, H=H, W=W,
        compute_dtype=compute_dtype, roll_impl=_roll_convention())

    # Per-step VMEM budget: double-buffered blocks + live f32 intermediates (im2col slabs
    # + activations), clamped to [16 MiB, 64 MiB] so it is safe on v5e/v6e/v7x.
    # TODO(synk): for UNet-scale H*W, add an H-tile grid axis with a 1-row halo so the
    # per-step working set stays inside v7x's 64 MiB VMEM.
    f32 = 4
    block_bytes = f32 * (2 * (Cin + Cout) * P + 9 * Cin * Cout + 9 * Cout * Cout
                         + P + 4 * Cout)
    live_bytes = f32 * P * (9 * Cin + 9 * Cout + 2 * Cout + 2 * Cin)
    vmem_limit = int(min(64 * 2**20, max(16 * 2**20, 4 * (block_bytes + live_bytes))))

    out = pl.pallas_call(
        kernel,
        out_shape=jax.ShapeDtypeStruct((N, Cout, P), jnp.float32),
        grid_spec=pltpu.PrefetchScalarGridSpec(
            num_scalar_prefetch=0,
            grid=(N,),
            in_specs=[
                pl.BlockSpec((1, Cin, P), lambda n: (n, 0, 0)),     # image n, (Cin, H*W)
                pl.BlockSpec((1, P), lambda n: (0, 0)),             # p % W
                pl.BlockSpec((Cout, 9 * Cin), lambda n: (0, 0)),    # conv1 weight matrix
                pl.BlockSpec((Cout, 1), lambda n: (0, 0)),          # conv1 folded BN scale
                pl.BlockSpec((Cout, 1), lambda n: (0, 0)),          # conv1 folded BN shift
                pl.BlockSpec((Cout, 9 * Cout), lambda n: (0, 0)),   # conv2 weight matrix
                pl.BlockSpec((Cout, 1), lambda n: (0, 0)),          # conv2 folded BN scale
                pl.BlockSpec((Cout, 1), lambda n: (0, 0)),          # conv2 folded BN shift
            ],
            out_specs=pl.BlockSpec((1, Cout, P), lambda n: (n, 0, 0)),
        ),
        compiler_params=pltpu.CompilerParams(
            dimension_semantics=("parallel",),      # batch axis -> v7x's two TensorCores
            vmem_limit_bytes=vmem_limit,
        ),
    )(x_flat, wcol, w1m, s1c, b1c, w2m, s2c, b2c)

    return out.reshape(N, Cout, H, W)


# --------------------------- deterministic parameter setup ------------------------------

def make_params(key, in_channels, out_channels, eps=1e-5):
    ks = jax.random.split(key, 12)

    def conv_block(kw, kb, kg, kbe, km, kv, cin, cout):
        # nn.Conv2d weight (OIHW) + bias, nn.BatchNorm2d affine params + running stats.
        w = jax.random.normal(kw, (cout, cin, 3, 3), jnp.float32) * 0.1
        bias = jax.random.normal(kb, (cout,), jnp.float32) * 0.1
        gamma = 1.0 + 0.1 * jax.random.normal(kg, (cout,), jnp.float32)
        beta = 0.1 * jax.random.normal(kbe, (cout,), jnp.float32)
        r_mean = 0.1 * jax.random.normal(km, (cout,), jnp.float32)
        r_var = jax.random.uniform(kv, (cout,), jnp.float32, minval=0.5, maxval=1.5)
        # Fold conv-bias + eval-mode BN into a single per-channel scale & shift.
        scale = gamma / jnp.sqrt(r_var + eps)
        shift = (bias - r_mean) * scale + beta
        return w, scale, shift

    w1, s1, b1 = conv_block(*ks[0:6], in_channels, out_channels)
    w2, s2, b2 = conv_block(*ks[6:12], out_channels, out_channels)
    return (w1, s1, b1, w2, s2, b2)


# --------------------------------- pure-JAX reference -----------------------------------

def double_conv_ref(x_nchw, params, compute_dtype=jnp.float32):
    """Reference in NCHW.  compute_dtype emulates the kernel's MXU operand dtype."""
    w1, s1, b1, w2, s2, b2 = params

    def radial_pad(t):  # replicate range (H), circular heading (W)
        t = jnp.concatenate([t[:, :, :1], t, t[:, :, -1:]], axis=2)
        return jnp.concatenate([t[:, :, :, -1:], t, t[:, :, :, :1]], axis=3)

    def block(t, w, s, b):
        y = jax.lax.conv_general_dilated(
            radial_pad(t).astype(compute_dtype), w.astype(compute_dtype),
            window_strides=(1, 1), padding="VALID",
            dimension_numbers=("NCHW", "OIHW", "NCHW"),
            preferred_element_type=jnp.float32,
            precision=jax.lax.Precision.HIGHEST)
        return jnp.maximum(y * s[None, :, None, None] + b[None, :, None, None], 0.0)

    return block(block(x_nchw, w1, s1, b1), w2, s2, b2)


# --------------------------------------- main -------------------------------------------

if __name__ == "__main__":
    key = jax.random.PRNGKey(0)
    k_x, k_p = jax.random.split(key)

    N, Cin, Cout, H, W = 2, 4, 8, 16, 16
    x = jax.random.normal(k_x, (N, Cin, H, W), jnp.float32)
    params = make_params(k_p, Cin, Cout)

    ref_f32 = double_conv_ref(x, params, compute_dtype=jnp.float32)
    ref_bf16 = double_conv_ref(x, params, compute_dtype=jnp.bfloat16)

    # Exact path: f32 MXU operands, matches the PyTorch module semantics tightly.
    out_f32 = jax.block_until_ready(double_conv_pallas(x, params, compute_dtype=jnp.float32))
    assert out_f32.shape == (N, Cout, H, W), out_f32.shape
    err32 = float(jnp.max(jnp.abs(out_f32 - ref_f32)))
    assert jnp.allclose(out_f32, ref_f32, rtol=1e-4, atol=1e-4), f"f32 path mismatch: {err32}"

    # Fast path (default): bf16 MXU operands + f32 accumulation, checked against a
    # precision-matched reference.
    out_bf16 = jax.block_until_ready(double_conv_pallas(x, params))
    errbf = float(jnp.max(jnp.abs(out_bf16 - ref_bf16)))
    assert jnp.allclose(out_bf16, ref_bf16, rtol=1e-2, atol=1e-2), f"bf16 path mismatch: {errbf}"

    print("KERNEL_OK")
</pallas_src>

<mosaic_0001>
module attributes {stable_mosaic.version = 11 : i64} {
  func.func @probe(%arg0: memref<8x128xf32, #tpu.memory_space<vmem>>, %arg1: memref<8x128xf32, #tpu.memory_space<vmem>>) attributes {dimension_semantics = [], scalar_prefetch = 0 : i64, scratch_operands = 0 : i64, tpu.core_type = #tpu.core_type<tc>} {
    %c0 = arith.constant 0 : index
    %c0_0 = arith.constant 0 : index
    %0 = vector.load %arg0[%c0, %c0_0] : memref<8x128xf32, #tpu.memory_space<vmem>>, vector<8x128xf32>
    %c1_i32 = arith.constant 1 : i32
    %1 = tpu.dynamic_rotate %0 by %c1_i32 dim 1 : vector<8x128xf32>, i32 -> vector<8x128xf32>
    %c0_1 = arith.constant 0 : index
    %c0_2 = arith.constant 0 : index
    %2 = vector.load %arg1[%c0_1, %c0_2] : memref<8x128xf32, #tpu.memory_space<vmem>>, vector<8x128xf32>
    tpu.vector_store %arg1[%c0_1, %c0_2], %1 {strides = array<i32>} : memref<8x128xf32, #tpu.memory_space<vmem>>, vector<8x128xf32>,
    return
  }
}

module attributes {stable_mosaic.version = 11 : i64} {
  func.func @_double_conv_kernel(%arg0: i32, %arg1: memref<1x4x256xf32, #tpu.memory_space<vmem>>, %arg2: memref<1x256xi32, #tpu.memory_space<vmem>>, %arg3: memref<8x36xf32, #tpu.memory_space<vmem>>, %arg4: memref<8x1xf32, #tpu.memory_space<vmem>>, %arg5: memref<8x1xf32, #tpu.memory_space<vmem>>, %arg6: memref<8x72xf32, #tpu.memory_space<vmem>>, %arg7: memref<8x1xf32, #tpu.memory_space<vmem>>, %arg8: memref<8x1xf32, #tpu.memory_space<vmem>>, %arg9: memref<1x8x256xf32, #tpu.memory_space<vmem>>) attributes {dimension_semantics = [#tpu.dimension_semantics<parallel>], iteration_bounds = array<i64: 2>, scalar_prefetch = 0 : i64, scratch_operands = 0 : i64, tpu.core_type = #tpu.core_type<tc>, window_params = [{transform_indices = @transform_0, window_bounds = array<i64: 1, 4, 256>}, {pipeline_mode = #tpu.pipeline_mode<synchronous>, transform_indices = @transform_1, window_bounds = array<i64: 1, 256>}, {pipeline_mode = #tpu.pipeline_mode<synchronous>, transform_indices = @transform_2, window_bounds = array<i64: 8, 36>}, {pipeline_mode = #tpu.pipeline_mode<synchronous>, transform_indices = @transform_3, window_bounds = array<i64: 8, 1>}, {pipeline_mode = #tpu.pipeline_mode<synchronous>, transform_indices = @transform_4, window_bounds = array<i64: 8, 1>}, {pipeline_mode = #tpu.pipeline_mode<synchronous>, transform_indices = @transform_5, window_bounds = array<i64: 8, 72>}, {pipeline_mode = #tpu.pipeline_mode<synchronous>, transform_indices = @transform_6, window_bounds = array<i64: 8, 1>}, {pipeline_mode = #tpu.pipeline_mode<synchronous>, transform_indices = @transform_7, window_bounds = array<i64: 8, 1>}, {transform_indices = @transform_8, window_bounds = array<i64: 1, 8, 256>}]} {
    %0 = tpu.iota {dimensions = array<i32: 1>} : vector<1x256xi32>
    %c0 = arith.constant 0 : index
    %c0_0 = arith.constant 0 : index
    %1 = vector.load %arg2[%c0, %c0_0] : memref<1x256xi32, #tpu.memory_space<vmem>>, vector<1x256xi32>
    %c0_i32 = arith.constant 0 : i32
    %2 = vector.broadcast %c0_i32 : i32 to vector<1x256xi32>
    %3 = arith.cmpi eq, %1, %2 : vector<1x256xi32>
    %c15_i32 = arith.constant 15 : i32
    %4 = vector.broadcast %c15_i32 : i32 to vector<1x256xi32>
    %5 = arith.cmpi eq, %1, %4 : vector<1x256xi32>
    %c16_i32 = arith.constant 16 : i32
    %6 = vector.broadcast %c16_i32 : i32 to vector<1x256xi32>
    %7 = arith.cmpi slt, %0, %6 : vector<1x256xi32>
    %c240_i32 = arith.constant 240 : i32
    %8 = vector.broadcast %c240_i32 : i32 to vector<1x256xi32>
    %9 = arith.cmpi sge, %0, %8 : vector<1x256xi32>
    %c0_1 = arith.constant 0 : index
    %c0_2 = arith.constant 0 : index
    %c0_3 = arith.constant 0 : index
    %10 = vector.load %arg1[%c0_1, %c0_2, %c0_3] : memref<1x4x256xf32, #tpu.memory_space<vmem>>, vector<1x4x256xf32>
    %11 = vector.shape_cast %10 : vector<1x4x256xf32> to vector<4x256xf32>
    %12 = vector.extract_strided_slice %11 {offsets = [0, 240], sizes = [4, 16], strides = [1, 1]} : vector<4x256xf32> to vector<4x16xf32>
    %13 = vector.extract_strided_slice %11 {offsets = [0, 0], sizes = [4, 240], strides = [1, 1]} : vector<4x256xf32> to vector<4x240xf32>
    %14 = tpu.concatenate %12, %13 in 1 : vector<4x16xf32>, vector<4x240xf32> -> vector<4x256xf32>
    %15 = vector.shape_cast %7 : vector<1x256xi1> to vector<1x256xi1>
    %16 = vector.broadcast %15 : vector<1x256xi1> to vector<4x256xi1>
    %17 = arith.select %16, %11, %14 : vector<4x256xi1>, vector<4x256xf32>
    %18 = vector.extract_strided_slice %11 {offsets = [0, 16], sizes = [4, 240], strides = [1, 1]} : vector<4x256xf32> to vector<4x240xf32>
    %19 = vector.extract_strided_slice %11 {offsets = [0, 0], sizes = [4, 16], strides = [1, 1]} : vector<4x256xf32> to vector<4x16xf32>
    %20 = tpu.concatenate %18, %19 in 1 : vector<4x240xf32>, vector<4x16xf32> -> vector<4x256xf32>
    %21 = vector.shape_cast %9 : vector<1x256xi1> to vector<1x256xi1>
    %22 = vector.broadcast %21 : vector<1x256xi1> to vector<4x256xi1>
    %23 = arith.select %22, %11, %20 : vector<4x256xi1>, vector<4x256xf32>
    %24 = vector.extract_strided_slice %17 {offsets = [0, 15], sizes = [4, 241], strides = [1, 1]} : vector<4x256xf32> to vector<4x241xf32>
    %25 = vector.extract_strided_slice %17 {offsets = [0, 0], sizes = [4, 15], strides = [1, 1]} : vector<4x256xf32> to vector<4x15xf32>
    %26 = tpu.concatenate %24, %25 in 1 : vector<4x241xf32>, vector<4x15xf32> -> vector<4x256xf32>
    %27 = vector.extract_strided_slice %17 {offsets = [0, 255], sizes = [4, 1], strides = [1, 1]} : vector<4x256xf32> to vector<4x1xf32>
    %28 = vector.extract_strided_slice %17 {offsets = [0, 0], sizes = [4, 255], strides = [1, 1]} : vector<4x256xf32> to vector<4x255xf32>
    %29 = tpu.concatenate %27, %28 in 1 : vector<4x1xf32>, vector<4x255xf32> -> vector<4x256xf32>
    %30 = vector.shape_cast %3 : vector<1x256xi1> to vector<1x256xi1>
    %31 = vector.broadcast %30 : vector<1x256xi1> to vector<4x256xi1>
    %32 = arith.select %31, %26, %29 : vector<4x256xi1>, vector<4x256xf32>
    %33 = vector.extract_strided_slice %17 {offsets = [0, 241], sizes = [4, 15], strides = [1, 1]} : vector<4x256xf32> to vector<4x15xf32>
    %34 = vector.extract_strided_slice %17 {offsets = [0, 0], sizes = [4, 241], strides = [1, 1]} : vector<4x256xf32> to vector<4x241xf32>
    %35 = tpu.concatenate %33, %34 in 1 : vector<4x15xf32>, vector<4x241xf32> -> vector<4x256xf32>
    %36 = vector.extract_strided_slice %17 {offsets = [0, 1], sizes = [4, 255], strides = [1, 1]} : vector<4x256xf32> to vector<4x255xf32>
    %37 = vector.extract_strided_slice %17 {offsets = [0, 0], sizes = [4, 1], strides = [1, 1]} : vector<4x256xf32> to vector<4x1xf32>
    %38 = tpu.concatenate %36, %37 in 1 : vector<4x255xf32>, vector<4x1xf32> -> vector<4x256xf32>
    %39 = vector.shape_cast %5 : vector<1x256xi1> to vector<1x256xi1>
    %40 = vector.broadcast %39 : vector<1x256xi1> to vector<4x256xi1>
    %41 = arith.select %40, %35, %38 : vector<4x256xi1>, vector<4x256xf32>
    %42 = vector.extract_strided_slice %11 {offsets = [0, 15], sizes = [4, 241], strides = [1, 1]} : vector<4x256xf32> to vector<4x241xf32>
    %43 = vector.extract_strided_slice %11 {offsets = [0, 0], sizes = [4, 15], strides = [1, 1]} : vector<4x256xf32> to vector<4x15xf32>
    %44 = tpu.concatenate %42, %43 in 1 : vector<4x241xf32>, vector<4x15xf32> -> vector<4x256xf32>
    %45 = vector.extract_strided_slice %11 {offsets = [0, 255], sizes = [4, 1], strides = [1, 1]} : vector<4x256xf32> to vector<4x1xf32>
    %46 = vector.extract_strided_slice %11 {offsets = [0, 0], sizes = [4, 255], strides = [1, 1]} : vector<4x256xf32> to vector<4x255xf32>
    %47 = tpu.concatenate %45, %46 in 1 : vector<4x1xf32>, vector<4x255xf32> -> vector<4x256xf32>
    %48 = vector.shape_cast %3 : vector<1x256xi1> to vector<1x256xi1>
    %49 = vector.broadcast %48 : vector<1x256xi1> to vector<4x256xi1>
    %50 = arith.select %49, %44, %47 : vector<4x256xi1>, vector<4x256xf32>
    %51 = vector.extract_strided_slice %11 {offsets = [0, 241], sizes = [4, 15], strides = [1, 1]} : vector<4x256xf32> to vector<4x15xf32>
    %52 = vector.extract_strided_slice %11 {offsets = [0, 0], sizes = [4, 241], strides = [1, 1]} : vector<4x256xf32> to vector<4x241xf32>
    %53 = tpu.concatenate %51, %52 in 1 : vector<4x15xf32>, vector<4x241xf32> -> vector<4x256xf32>
    %54 = vector.extract_strided_slice %11 {offsets = [0, 1], sizes = [4, 255], strides = [1, 1]} : vector<4x256xf32> to vector<4x255xf32>
    %55 = vector.extract_strided_slice %11 {offsets = [0, 0], sizes = [4, 1], strides = [1, 1]} : vector<4x256xf32> to vector<4x1xf32>
    %56 = tpu.concatenate %54, %55 in 1 : vector<4x255xf32>, vector<4x1xf32> -> vector<4x256xf32>
    %57 = vector.shape_cast %5 : vector<1x256xi1> to vector<1x256xi1>
    %58 = vector.broadcast %57 : vector<1x256xi1> to vector<4x256xi1>
    %59 = arith.select %58, %53, %56 : vector<4x256xi1>, vector<4x256xf32>
    %60 = vector.extract_strided_slice %23 {offsets = [0, 15], sizes = [4, 241], strides = [1, 1]} : vector<4x256xf32> to vector<4x241xf32>
    %61 = vector.extract_strided_slice %23 {offsets = [0, 0], sizes = [4, 15], strides = [1, 1]} : vector<4x256xf32> to vector<4x15xf32>
    %62 = tpu.concatenate %60, %61 in 1 : vector<4x241xf32>, vector<4x15xf32> -> vector<4x256xf32>
    %63 = vector.extract_strided_slice %23 {offsets = [0, 255], sizes = [4, 1], strides = [1, 1]} : vector<4x256xf32> to vector<4x1xf32>
    %64 = vector.extract_strided_slice %23 {offsets = [0, 0], sizes = [4, 255], strides = [1, 1]} : vector<4x256xf32> to vector<4x255xf32>
    %65 = tpu.concatenate %63, %64 in 1 : vector<4x1xf32>, vector<4x255xf32> -> vector<4x256xf32>
    %66 = vector.shape_cast %3 : vector<1x256xi1> to vector<1x256xi1>
    %67 = vector.broadcast %66 : vector<1x256xi1> to vector<4x256xi1>
    %68 = arith.select %67, %62, %65 : vector<4x256xi1>, vector<4x256xf32>
    %69 = vector.extract_strided_slice %23 {offsets = [0, 241], sizes = [4, 15], strides = [1, 1]} : vector<4x256xf32> to vector<4x15xf32>
    %70 = vector.extract_strided_slice %23 {offsets = [0, 0], sizes = [4, 241], strides = [1, 1]} : vector<4x256xf32> to vector<4x241xf32>
    %71 = tpu.concatenate %69, %70 in 1 : vector<4x15xf32>, vector<4x241xf32> -> vector<4x256xf32>
    %72 = vector.extract_strided_slice %23 {offsets = [0, 1], sizes = [4, 255], strides = [1, 1]} : vector<4x256xf32> to vector<4x255xf32>
    %73 = vector.extract_strided_slice %23 {offsets = [0, 0], sizes = [4, 1], strides = [1, 1]} : vector<4x256xf32> to vector<4x1xf32>
    %74 = tpu.concatenate %72, %73 in 1 : vector<4x255xf32>, vector<4x1xf32> -> vector<4x256xf32>
    %75 = vector.shape_cast %5 : vector<1x256xi1> to vector<1x256xi1>
    %76 = vector.broadcast %75 : vector<1x256xi1> to vector<4x256xi1>
    %77 = arith.select %76, %71, %74 : vector<4x256xi1>, vector<4x256xf32>
    %78 = tpu.concatenate %32, %17, %41, %50, %11, %59, %68, %23, %77 in 0 : vector<4x256xf32>, vector<4x256xf32>, vector<4x256xf32>, vector<4x256xf32>, vector<4x256xf32>, vector<4x256xf32>, vector<4x256xf32>, vector<4x256xf32>, vector<4x256xf32> -> vector<36x256xf32>
    %c0_4 = arith.constant 0 : index
    %c0_5 = arith.constant 0 : index
    %79 = vector.load %arg3[%c0_4, %c0_5] : memref<8x36xf32, #tpu.memory_space<vmem>>, vector<8x36xf32>
    %cst = arith.constant dense<0.000000e+00> : vector<8x256xf32>
    %80 = tpu.matmul %79, %78, %cst {dimension_numbers = #tpu.dot_dimension_numbers<[1], [0], [0], [1], [0, 0, 1, 1], [], []>} : vector<8x36xf32>, vector<36x256xf32>, vector<8x256xf32> -> vector<8x256xf32>
    %c0_6 = arith.constant 0 : index
    %c0_7 = arith.constant 0 : index
    %81 = vector.load %arg4[%c0_6, %c0_7] : memref<8x1xf32, #tpu.memory_space<vmem>>, vector<8x1xf32>
    %82 = vector.broadcast %81 : vector<8x1xf32> to vector<8x256xf32>
    %83 = arith.mulf %80, %82 : vector<8x256xf32>
    %c0_8 = arith.constant 0 : index
    %c0_9 = arith.constant 0 : index
    %84 = vector.load %arg5[%c0_8, %c0_9] : memref<8x1xf32, #tpu.memory_space<vmem>>, vector<8x1xf32>
    %85 = vector.broadcast %84 : vector<8x1xf32> to vector<8x256xf32>
    %86 = arith.addf %83, %85 : vector<8x256xf32>
    %cst_10 = arith.constant 0.000000e+00 : f32
    %87 = vector.broadcast %cst_10 : f32 to vector<8x256xf32>
    %88 = arith.maximumf %86, %87 : vector<8x256xf32>
    %89 = vector.extract_strided_slice %88 {offsets = [0, 240], sizes = [8, 16], strides = [1, 1]} : vector<8x256xf32> to vector<8x16xf32>
    %90 = vector.extract_strided_slice %88 {offsets = [0, 0], sizes = [8, 240], strides = [1, 1]} : vector<8x256xf32> to vector<8x240xf32>
    %91 = tpu.concatenate %89, %90 in 1 : vector<8x16xf32>, vector<8x240xf32> -> vector<8x256xf32>
    %92 = vector.shape_cast %7 : vector<1x256xi1> to vector<1x256xi1>
    %93 = vector.broadcast %92 : vector<1x256xi1> to vector<8x256xi1>
    %94 = arith.select %93, %88, %91 : vector<8x256xi1>, vector<8x256xf32>
    %95 = vector.extract_strided_slice %88 {offsets = [0, 16], sizes = [8, 240], strides = [1, 1]} : vector<8x256xf32> to vector<8x240xf32>
    %96 = vector.extract_strided_slice %88 {offsets = [0, 0], sizes = [8, 16], strides = [1, 1]} : vector<8x256xf32> to vector<8x16xf32>
    %97 = tpu.concatenate %95, %96 in 1 : vector<8x240xf32>, vector<8x16xf32> -> vector<8x256xf32>
    %98 = vector.shape_cast %9 : vector<1x256xi1> to vector<1x256xi1>
    %99 = vector.broadcast %98 : vector<1x256xi1> to vector<8x256xi1>
    %100 = arith.select %99, %88, %97 : vector<8x256xi1>, vector<8x256xf32>
    %101 = vector.extract_strided_slice %94 {offsets = [0, 15], sizes = [8, 241], strides = [1, 1]} : vector<8x256xf32> to vector<8x241xf32>
    %102 = vector.extract_strided_slice %94 {offsets = [0, 0], sizes = [8, 15], strides = [1, 1]} : vector<8x256xf32> to vector<8x15xf32>
    %103 = tpu.concatenate %101, %102 in 1 : vector<8x241xf32>, vector<8x15xf32> -> vector<8x256xf32>
    %104 = vector.extract_strided_slice %94 {offsets = [0, 255], sizes = [8, 1], strides = [1, 1]} : vector<8x256xf32> to vector<8x1xf32>
    %105 = vector.extract_strided_slice %94 {offsets = [0, 0], sizes = [8, 255], strides = [1, 1]} : vector<8x256xf32> to vector<8x255xf32>
    %106 = tpu.concatenate %104, %105 in 1 : vector<8x1xf32>, vector<8x255xf32> -> vector<8x256xf32>
    %107 = vector.shape_cast %3 : vector<1x256xi1> to vector<1x256xi1>
    %108 = vector.broadcast %107 : vector<1x256xi1> to vector<8x256xi1>
    %109 = arith.select %108, %103, %106 : vector<8x256xi1>, vector<8x256xf32>
    %110 = vector.extract_strided_slice %94 {offsets = [0, 241], sizes = [8, 15], strides = [1, 1]} : vector<8x256xf32> to vector<8x15xf32>
    %111 = vector.extract_strided_slice %94 {offsets = [0, 0], sizes = [8, 241], strides = [1, 1]} : vector<8x256xf32> to vector<8x241xf32>
    %112 = tpu.concatenate %110, %111 in 1 : vector<8x15xf32>, vector<8x241xf32> -> vector<8x256xf32>
    %113 = vector.extract_strided_slice %94 {offsets = [0, 1], sizes = [8, 255], strides = [1, 1]} : vector<8x256xf32> to vector<8x255xf32>
    %114 = vector.extract_strided_slice %94 {offsets = [0, 0], sizes = [8, 1], strides = [1, 1]} : vector<8x256xf32> to vector<8x1xf32>
    %115 = tpu.concatenate %113, %114 in 1 : vector<8x255xf32>, vector<8x1xf32> -> vector<8x256xf32>
    %116 = vector.shape_cast %5 : vector<1x256xi1> to vector<1x256xi1>
    %117 = vector.broadcast %116 : vector<1x256xi1> to vector<8x256xi1>
    %118 = arith.select %117, %112, %115 : vector<8x256xi1>, vector<8x256xf32>
    %119 = vector.extract_strided_slice %88 {offsets = [0, 15], sizes = [8, 241], strides = [1, 1]} : vector<8x256xf32> to vector<8x241xf32>
    %120 = vector.extract_strided_slice %88 {offsets = [0, 0], sizes = [8, 15], strides = [1, 1]} : vector<8x256xf32> to vector<8x15xf32>
    %121 = tpu.concatenate %119, %120 in 1 : vector<8x241xf32>, vector<8x15xf32> -> vector<8x256xf32>
    %122 = vector.extract_strided_slice %88 {offsets = [0, 255], sizes = [8, 1], strides = [1, 1]} : vector<8x256xf32> to vector<8x1xf32>
    %123 = vector.extract_strided_slice %88 {offsets = [0, 0], sizes = [8, 255], strides = [1, 1]} : vector<8x256xf32> to vector<8x255xf32>
    %124 = tpu.concatenate %122, %123 in 1 : vector<8x1xf32>, vector<8x255xf32> -> vector<8x256xf32>
    %125 = vector.shape_cast %3 : vector<1x256xi1> to vector<1x256xi1>
    %126 = vector.broadcast %125 : vector<1x256xi1> to vector<8x256xi1>
    %127 = arith.select %126, %121, %124 : vector<8x256xi1>, vector<8x256xf32>
    %128 = vector.extract_strided_slice %88 {offsets = [0, 241], sizes = [8, 15], strides = [1, 1]} : vector<8x256xf32> to vector<8x15xf32>
    %129 = vector.extract_strided_slice %88 {offsets = [0, 0], sizes = [8, 241], strides = [1, 1]} : vector<8x256xf32> to vector<8x241xf32>
    %130 = tpu.concatenate %128, %129 in 1 : vector<8x15xf32>, vector<8x241xf32> -> vector<8x256xf32>
    %131 = vector.extract_strided_slice %88 {offsets = [0, 1], sizes = [8, 255], strides = [1, 1]} : vector<8x256xf32> to vector<8x255xf32>
    %132 = vector.extract_strided_slice %88 {offsets = [0, 0], sizes = [8, 1], strides = [1, 1]} : vector<8x256xf32> to vector<8x1xf32>
    %133 = tpu.concatenate %131, %132 in 1 : vector<8x255xf32>, vector<8x1xf32> -> vector<8x256xf32>
    %134 = vector.shape_cast %5 : vector<1x256xi1> to vector<1x256xi1>
    %135 = vector.broadcast %134 : vector<1x256xi1> to vector<8x256xi1>
    %136 = arith.select %135, %130, %133 : vector<8x256xi1>, vector<8x256xf32>
    %137 = vector.extract_strided_slice %100 {offsets = [0, 15], sizes = [8, 241], strides = [1, 1]} : vector<8x256xf32> to vector<8x241xf32>
    %138 = vector.extract_strided_slice %100 {offsets = [0, 0], sizes = [8, 15], strides = [1, 1]} : vector<8x256xf32> to vector<8x15xf32>
    %139 = tpu.concatenate %137, %138 in 1 : vector<8x241xf32>, vector<8x15xf32> -> vector<8x256xf32>
    %140 = vector.extract_strided_slice %100 {offsets = [0, 255], sizes = [8, 1], strides = [1, 1]} : vector<8x256xf32> to vector<8x1xf32>
    %141 = vector.extract_strided_slice %100 {offsets = [0, 0], sizes = [8, 255], strides = [1, 1]} : vector<8x256xf32> to vector<8x255xf32>
    %142 = tpu.concatenate %140, %141 in 1 : vector<8x1xf32>, vector<8x255xf32> -> vector<8x256xf32>
    %143 = vector.shape_cast %3 : vector<1x256xi1> to vector<1x256xi1>
    %144 = vector.broadcast %143 : vector<1x256xi1> to vector<8x256xi1>
    %145 = arith.select %144, %139, %142 : vector<8x256xi1>, vector<8x256xf32>
    %146 = vector.extract_strided_slice %100 {offsets = [0, 241], sizes = [8, 15], strides = [1, 1]} : vector<8x256xf32> to vector<8x15xf32>
    %147 = vector.extract_strided_slice %100 {offsets = [0, 0], sizes = [8, 241], strides = [1, 1]} : vector<8x256xf32> to vector<8x241xf32>
    %148 = tpu.concatenate %146, %147 in 1 : vector<8x15xf32>, vector<8x241xf32> -> vector<8x256xf32>
    %149 = vector.extract_strided_slice %100 {offsets = [0, 1], sizes = [8, 255], strides = [1, 1]} : vector<8x256xf32> to vector<8x255xf32>
    %150 = vector.extract_strided_slice %100 {offsets = [0, 0], sizes = [8, 1], strides = [1, 1]} : vector<8x256xf32> to vector<8x1xf32>
    %151 = tpu.concatenate %149, %150 in 1 : vector<8x255xf32>, vector<8x1xf32> -> vector<8x256xf32>
    %152 = vector.shape_cast %5 : vector<1x256xi1> to vector<1x256xi1>
    %153 = vector.broadcast %152 : vector<1x256xi1> to vector<8x256xi1>
    %154 = arith.select %153, %148, %151 : vector<8x256xi1>, vector<8x256xf32>
    %155 = tpu.concatenate %109, %94, %118, %127, %88, %136, %145, %100, %154 in 0 : vector<8x256xf32>, vector<8x256xf32>, vector<8x256xf32>, vector<8x256xf32>, vector<8x256xf32>, vector<8x256xf32>, vector<8x256xf32>, vector<8x256xf32>, vector<8x256xf32> -> vector<72x256xf32>
    %c0_11 = arith.constant 0 : index
    %c0_12 = arith.constant 0 : index
    %156 = vector.load %arg6[%c0_11, %c0_12] : memref<8x72xf32, #tpu.memory_space<vmem>>, vector<8x72xf32>
    %cst_13 = arith.constant dense<0.000000e+00> : vector<8x256xf32>
    %157 = tpu.matmul %156, %155, %cst_13 {dimension_numbers = #tpu.dot_dimension_numbers<[1], [0], [0], [1], [0, 0, 1, 1], [], []>} : vector<8x72xf32>, vector<72x256xf32>, vector<8x256xf32> -> vector<8x256xf32>
    %c0_14 = arith.constant 0 : index
    %c0_15 = arith.constant 0 : index
    %158 = vector.load %arg7[%c0_14, %c0_15] : memref<8x1xf32, #tpu.memory_space<vmem>>, vector<8x1xf32>
    %159 = vector.broadcast %158 : vector<8x1xf32> to vector<8x256xf32>
    %160 = arith.mulf %157, %159 : vector<8x256xf32>
    %c0_16 = arith.constant 0 : index
    %c0_17 = arith.constant 0 : index
    %161 = vector.load %arg8[%c0_16, %c0_17] : memref<8x1xf32, #tpu.memory_space<vmem>>, vector<8x1xf32>
    %162 = vector.broadcast %161 : vector<8x1xf32> to vector<8x256xf32>
    %163 = arith.addf %160, %162 : vector<8x256xf32>
    %cst_18 = arith.constant 0.000000e+00 : f32
    %164 = vector.broadcast %cst_18 : f32 to vector<8x256xf32>
    %165 = arith.maximumf %163, %164 : vector<8x256xf32>
    %c0_19 = arith.constant 0 : index
    %c0_20 = arith.constant 0 : index
    %c0_21 = arith.constant 0 : index
    %166 = vector.load %arg9[%c0_19, %c0_20, %c0_21] : memref<1x8x256xf32, #tpu.memory_space<vmem>>, vector<1x8x256xf32>
    %167 = vector.shape_cast %166 : vector<1x8x256xf32> to vector<8x256xf32>
    %168 = vector.shape_cast %165 : vector<8x256xf32> to vector<1x8x256xf32>
    tpu.vector_store %arg9[%c0_19, %c0_20, %c0_21], %168 {strides = array<i32>} : memref<1x8x256xf32, #tpu.memory_space<vmem>>, vector<1x8x256xf32>,
    return
  }
  func.func @transform_0(%arg0: i32) -> (i32, i32, i32) {
    %c0_i32 = arith.constant 0 : i32
    %c0_i32_0 = arith.constant 0 : i32
    %c0_i32_1 = arith.constant 0 : i32
    return %arg0, %c0_i32, %c0_i32_0 : i32, i32, i32
  }
  func.func @transform_1(%arg0: i32) -> (i32, i32) {
    %c0_i32 = arith.constant 0 : i32
    %c0_i32_0 = arith.constant 0 : i32
    %c0_i32_1 = arith.constant 0 : i32
    return %c0_i32, %c0_i32_0 : i32, i32
  }
  func.func @transform_2(%arg0: i32) -> (i32, i32) {
    %c0_i32 = arith.constant 0 : i32
    %c0_i32_0 = arith.constant 0 : i32
    %c0_i32_1 = arith.constant 0 : i32
    return %c0_i32, %c0_i32_0 : i32, i32
  }
  func.func @transform_3(%arg0: i32) -> (i32, i32) {
    %c0_i32 = arith.constant 0 : i32
    %c0_i32_0 = arith.constant 0 : i32
    %c0_i32_1 = arith.constant 0 : i32
    return %c0_i32, %c0_i32_0 : i32, i32
  }
  func.func @transform_4(%arg0: i32) -> (i32, i32) {
    %c0_i32 = arith.constant 0 : i32
    %c0_i32_0 = arith.constant 0 : i32
    %c0_i32_1 = arith.constant 0 : i32
    return %c0_i32, %c0_i32_0 : i32, i32
  }
  func.func @transform_5(%arg0: i32) -> (i32, i32) {
    %c0_i32 = arith.constant 0 : i32
    %c0_i32_0 = arith.constant 0 : i32
    %c0_i32_1 = arith.constant 0 : i32
    return %c0_i32, %c0_i32_0 : i32, i32
  }
  func.func @transform_6(%arg0: i32) -> (i32, i32) {
    %c0_i32 = arith.constant 0 : i32
    %c0_i32_0 = arith.constant 0 : i32
    %c0_i32_1 = arith.constant 0 : i32
    return %c0_i32, %c0_i32_0 : i32, i32
  }
  func.func @transform_7(%arg0: i32) -> (i32, i32) {
    %c0_i32 = arith.constant 0 : i32
    %c0_i32_0 = arith.constant 0 : i32
    %c0_i32_1 = arith.constant 0 : i32
    return %c0_i32, %c0_i32_0 : i32, i32
  }
  func.func @transform_8(%arg0: i32) -> (i32, i32, i32) {
    %c0_i32 = arith.constant 0 : i32
    %c0_i32_0 = arith.constant 0 : i32
    %c0_i32_1 = arith.constant 0 : i32
    return %arg0, %c0_i32, %c0_i32_0 : i32, i32, i32
  }
}

</mosaic_0001>

<bundles_post_ra>
// kernel: tpu_custom_call.1
= control target key start
LH: loop header
LB: loop body
LE: loop exit
PB: predicated region body
PF: predicated region fallthrough
CT: control target
= control target key end

     0   :  { %6 = vsyncpa [#allocation3], 0  ;;  %s128_s0 = inlined_call_operand.hbm [shape: f32[8,128], index: 0, kind: input, shape index: {}]   ;;  %s129_s1 = inlined_call_operand.hbm [shape: f32[8,128], index: 1, kind: output, shape index: {}]  }
   0x1   :  { %7 = vsyncpa [#allocation4], 0  ;;  %s91_s6 = smov [#allocation2]   ;;  %s43_s10 = scalar_lea.hbm %s128_s0, 128 }
   0x2   :  { %s14_s7 = sshll.u32 %s91_s6, 4  ;;  %p44_p0 = scmp.ne.s32.totalorder %s128_s0, %s43_s10  ;;  %s15_s7 = int_to_ptr.vmem [resolvable:$true] %s14_s7 }
   0x3   :  { %p47_p1 = scmp.lt.u32.totalorder %s43_s10, %s128_s0 }
   0x5   :  { %p49_p2 = pnand %p47_p1, %p44_p0 }
   0x7   :  { %52 = shalt.err (!%p49_p2)
}
   0x8   :  { %s53_s15 = scalar_lea.vmem %s15_s7, 128  ;;  %p58_p4 = scmp.lt.s32.totalorder %s15_s7, %s15_s7 }
   0x9   :  { %p54_p3 = scmp.ne.s32.totalorder %s15_s7, %s53_s15  ;;  %p59_p5 = scmp.lt.s32.totalorder %s53_s15, %s53_s15 }
   0xb   :  { %p60_p6 = por %p59_p5, %p58_p4 }
   0xd   :  { %p61_p7 = pnand %p60_p6, %p54_p3 }
   0xf   :  { %64 = shalt.err (!%p61_p7)
}
  0x10   :  { %17 = dma.hbm_to_vmem [thread:$0]  %s128_s0, 128, %s15_s7, [#allocation3]  }
  0x11   :  { %87 = dma.done.wait [#allocation3], 128  }
  0x12   :  { %88 = vsyncadd [#allocation3], 4294967168  ;;  %v21_v0 = vld [vmem:[#allocation2] sm:$0xff]  ;;  %s92_s18 = smov 1   ;;  %s93_s19 = smov [#allocation5]  }
  0x13   :  { %22 = vrot.lane.b32.xlu0 %v21_v0, %s92_s18  ;;  %s31_s20 = sshll.u32 %s93_s19, 4  ;;  %s32_s20 = int_to_ptr.vmem [resolvable:$true] %s31_s20 }
  0x14   :  { %s65_s21 = scalar_lea.vmem %s32_s20, 128  ;;  %p70_p9 = scmp.lt.s32.totalorder %s32_s20, %s32_s20 }
  0x15   :  { %p66_p8 = scmp.ne.s32.totalorder %s32_s20, %s65_s21  ;;  %p71_p10 = scmp.lt.s32.totalorder %s65_s21, %s65_s21 }
  0x17   :  { %p72_p11 = por %p71_p10, %p70_p9 }
  0x19   :  { %p73_p12 = pnand %p72_p11, %p66_p8 }
  0x85   :  { %v23_v1 = vpop.permute.xlu0 %22 }
  0x86   :  { %24 = vst [vmem:[#allocation5] sm:$0xff] %v23_v1 }
  0x87   :  { %76 = shalt.err (!%p73_p12)
}
  0x88   :  { %s77_s0 = scalar_lea.hbm %s129_s1, 128 }
  0x89   :  { %p78_p13 = scmp.ne.s32.totalorder %s129_s1, %s77_s0  ;;  %p81_p0 = scmp.lt.u32.totalorder %s77_s0, %s129_s1 }
  0x8b   :  { %p83_p1 = pnand %p81_p0, %p78_p13 }
  0x8d   :  { %86 = shalt.err (!%p83_p1)
}
  0x8e   :  { %34 = dma.vmem_to_hbm [thread:$0]  %s32_s20, 128, %s129_s1, [#allocation4]  }
  0x8f   :  { %89 = dma.done.wait [#allocation4], 128  }
  0x90   :  { %90 = vsyncadd [#allocation4], 4294967168 }
  0x91   :  { %38 = vsyncpa [#allocation3], 1 }
  0x92   :  { %39 = vsyncpa [#allocation4], 1 }

// kernel: tpu_custom_call.1
= control target key start
LH: loop header
LB: loop body
LE: loop exit
PB: predicated region body
PF: predicated region fallthrough
CT: control target
= control target key end

     0   :  { %13 = vsyncpa [#allocation3], 0  ;;  %s1641_s0 = inlined_call_operand.vmem [shape: f32[2,4,256], index: 0, kind: input, shape index: {}]   ;;  %s1642_s1 = inlined_call_operand.vmem [shape: s32[1,256], index: 1, kind: input, shape index: {}]   ;;  %s1643_s2 = inlined_call_operand.vmem [shape: f32[8,36], index: 2, kind: input, shape index: {}]   ;;  %s1644_s3 = inlined_call_operand.vmem [shape: f32[8,1], index: 3, kind: input, shape index: {}]   ;;  %s1645_s4 = inlined_call_operand.vmem [shape: f32[8,1], index: 4, kind: input, shape index: {}]   ;;  %s1646_s5 = inlined_call_operand.vmem [shape: f32[8,72], index: 5, kind: input, shape index: {}]   ;;  %s1647_s6 = inlined_call_operand.vmem [shape: f32[8,1], index: 6, kind: input, shape index: {}]   ;;  %s1648_s7 = inlined_call_operand.vmem [shape: f32[8,1], index: 7, kind: input, shape index: {}]   ;;  %s1649_s8 = inlined_call_operand.hbm [shape: f32[2,8,256], index: 8, kind: output, shape index: {}]  }
   0x1   :  { %15 = vsyncpa [#allocation3 + $0x1], 0  ;;  %s1267_s27 = smov 0   ;;  %s1269_s28 = smov 0  }
   0x2   :  { %s1271_s29 = smov 0   ;;  %s1273_s30 = smov 0  }
   0x3 LB: > { %s1288_s9 = sadd.s32 4294967295, %s1211_s30   ;;  %s947_s10 = sadd.s32 4294967294, %s1211_s30   ;;  %s1211_s30 = sphi %s1273_s30, %s1655_s30   ;;  %s1207_s29 = sphi %s1271_s29, %s1654_s29   ;;  %s1203_s28 = sphi %s1269_s28, %s1653_s28   ;;  %s1199_s27 = sphi %s1267_s27, %s1652_s27  }
   0x4   : > { %s1292_s11 = sadd.s32 1, %s1211_s30   ;;  %s201_s12 = sadd.s32 1, %s1207_s29 }
   0x5   : > { %s198_s13 = ssub.s32 %s1211_s30, %s1292_s11  ;;  %p211_p0 = scmp.ne.s32.totalorder %s1207_s29, %s1203_s28 }
   0x6   : > { %p199_p1 = scmp.eq.s32.totalorder %s198_s13, 0  ;;  %p212_p2 = scmp.eq.s32.totalorder %s1288_s9, 1 }
   0x7   : > { %p217_p3 = scmp.ne.s32.totalorder %s1203_s28, %s1199_s27  ;;  %p218_p4 = scmp.eq.s32.totalorder %s947_s10, 1 }
   0x8   : > { %s1303_s14 = scalar_select %p199_p1, %s1207_s29, %s201_s12  }
   0x9   : > { %p1305_p5 = por %p212_p2, %p211_p0  ;;  %p1309_p6 = por %p218_p4, %p217_p3 }
   0xa   : > { %p950_p7 = scmp.ge.s32.totalorder %s1211_s30, 1  ;;  %p265_p8 = scmp.lt.s32.totalorder %s1211_s30, 3 }
   0xc   : > { %p266_p9 = pnand %p950_p7, %p265_p8 }
   0xd   : > { %p299_p10 = scmp.lt.s32.totalorder (!%p266_p9), %s1288_s9, 1  ;;  %s1213_s22 = smov (!%p266_p9), 112   ;;  %v1218_v4 = vmov (!%p266_p9), 0   ;;  %v304_v5 = vlaneseq (!%p266_p9)  ;;  %vm322_vm0 = vcmask (!%p266_p9), 130048   ;;  %vm338_vm2 = vcmask (!%p266_p9), 916480   ;;  %v611_v24 = vld [vmem:[%s1644_s3] sm:$0xff] (!%p266_p9) }
   0xe   : > { %269 = sbr.rel (%p266_p9) target bundleno = 1004 (0x3ec), region = 52  ;;  %s1214_s23 = smov (!%p266_p9), 16   ;;  %1091 = vset.pattern.permute.xlu1 (!%p266_p9), %v1218_v4  ;;  %1092 = vset.pattern.permute.xlu0 (!%p266_p9), %v1218_v4  ;;  %v1220_v23 = vmov (!%p266_p9), 0.0   ;;  %v619_v25 = vld [vmem:[%s1645_s4] sm:$0xff] (!%p266_p9)  ;;  %vm356_vm6 = vcmask (!%p266_p9), 924672   ;;  %vm367_vm7 = vcmask (!%p266_p9), 7168  }
   0xf   : > { %s1215_s24 = smov (!%p266_p9), 113   ;;  %s1216_s25 = smov (!%p266_p9), 15   ;;  %v1339_v6 = vand.u32 (!%p266_p9), 127, %v304_v5  ;;  %604 = vmatprep.mubr.f32.mxu0 (!%p266_p9), %v1220_v23  ;;  %846 = vmatprep.mubr.f32.mxu1 (!%p266_p9), %v1220_v23  ;;  %v307_v26 = vld [vmem:[%s1642_s1] sm:$0x3] (!%p266_p9)  ;;  %v374_v27 = vshrl.u32 (!%p266_p9), %v304_v5, 7 }
  0x10   : > { %s1217_s26 = smov (!%p266_p9), 1   ;;  %s1219_s10 = smov (!%p266_p9), 127   ;;  %vm309_vm4 = vcmp.eq.s32.totalorder (!%p266_p9), %v307_v26, 15  ;;  %vm308_vm5 = vcmp.eq.s32.totalorder (!%p266_p9), %v307_v26, 0  ;;  %vm390_vm8 = vcmask (!%p266_p9), 121856   ;;  %vm399_vm9 = vcmask (!%p266_p9), 1039360  }
  0x11   : > { %vm310_vm1 = vcmp.lt.s32.totalorder (!%p266_p9), %v1339_v6, 16  ;;  %v1343_v10 = vadd.s32 (!%p266_p9), 128, %v1339_v6  ;;  %v375_v30 = vsub.s32 (!%p266_p9), 0, %v374_v27  ;;  %v379_v31 = vsub.s32 (!%p266_p9), 1, %v374_v27 }
  0x12   : > { %v405_v32 = vsel (!%p266_p9), %vm309_vm4, 1, %v1218_v4  ;;  %v372_v33 = vsel (!%p266_p9), %vm308_vm5, 1, %v1218_v4  ;;  %vm520_vm14 = vcmask (!%p266_p9), 1043456   ;;  %vm530_vm15 = vcmask (!%p266_p9), 293888  }
  0x13   : > { %vm313_vm3 = vcmp.ge.s32.totalorder (!%p266_p9), %v1343_v10, 240  ;;  %v1395_v36 = vrot.slane (!%p266_p9), %v405_v32, %v375_v30  ;;  %v1397_v37 = vrot.slane (!%p266_p9), %v405_v32, %v379_v31  ;;  %v1399_v38 = vrot.slane (!%p266_p9), %v372_v33, %v379_v31  ;;  %v861_v10 = vld [vmem:[%s1648_s7] sm:$0xff] (!%p266_p9) }
  0x14   : > { %v1401_v39 = vrot.slane (!%p266_p9), %v372_v33, %v375_v30 }
  0x15   : > { %s300_s17 = scalar_select %p299_p10, %s1288_s9, 1  ;;  %vm414_vm10 = vcmp.eq.s32.totalorder %v1395_v36, 1  ;;  %vm415_vm11 = vcmp.eq.s32.totalorder %v1397_v37, 1  ;;  %vm382_vm12 = vcmp.eq.s32.totalorder %v1399_v38, 1 }
  0x16   : > { %vm381_vm13 = vcmp.eq.s32.totalorder %v1401_v39, 1 }
  0x17   : > { %s963_s18 = sshll.u32 %s300_s17, 3 }
  0x18   : > { %s303_s21 = scalar_lea.vmem %s1641_s0, %s963_s18  ;;  %s964_s18 = sshll.u32 %s1288_s9, 8 }
  0x19   : > { %v1320_v0 = vld [vmem:[%s303_s21] sm:$0xff]  ;;  %s1221_s9 = smov [#allocation2]  }
  0x1a   : > { %v1324_v1 = vcombine.high %v1320_v0, %v1320_v0 }
  0x1c   : > { %v1036_v2 = vpack.i.bf16 %v1320_v0, %v1324_v1  ;;  %336 = vrot.lane.b32.xlu1 %v1324_v1, %s1213_s22  ;;  %v1041_v3 = vpack.i.bf16 %v1324_v1, %v1320_v0 }
  0x1e   : > { %1037 = vrot.lane.b32.xlu0 %v1036_v2, %s1214_s23 }
  0x20   : > { %1042 = vrot.lane.b32.xlu1 %v1041_v3, %s1215_s24 }
  0x22   : > { %334 = vrot.lane.b32.xlu0 %v1320_v0, %s1213_s22 }
  0x24   : > { %1052 = vrot.lane.b32.xlu1 %v1036_v2, %s1216_s25 }
  0x26   : > { %1047 = vrot.lane.b32.xlu0 %v1036_v2, %s1217_s26 }
  0x2a   : > { %1057 = vrot.lane.b32.xlu0 %v1041_v3, %s1219_s10 }
  0x8e   : > { %v337_v11 = vpop.permute.xlu1 %336 }
  0x90   : > { %v1038_v7 = vpop.permute.xlu0 %1037 }
  0x91   : > { %v1040_v8 = vunpack.i.h.bf16 %v1038_v7  ;;  %v1039_v9 = vunpack.i.l.bf16 %v1038_v7 }
  0x92   : > { %v1043_v28 = vpop.permute.xlu1 %1042 }
  0x93   : > { %v1346_v12 = vsel %vm322_vm0, %v1040_v8, %v1039_v9  ;;  %v326_v13 = vsel %vm322_vm0, %v1039_v9, %v1040_v8  ;;  %v1045_v40 = vunpack.i.h.bf16 %v1043_v28  ;;  %v1044_v41 = vunpack.i.l.bf16 %v1043_v28 }
  0x94   : > { %v1352_v14 = vsel %vm310_vm1, %v1320_v0, %v326_v13  ;;  %v335_v15 = vpop.permute.xlu0 %334  ;;  %v501_v2 = vrot.slane %v1346_v12, 4 }
  0x95   : > { %v1066_v16 = vpack.i.bf16 %v1352_v14, %v1346_v12  ;;  %v1061_v17 = vpack.i.bf16 %v1346_v12, %v1352_v14  ;;  %v343_v18 = vsel %vm338_vm2, %v337_v11, %v335_v15  ;;  %v1363_v19 = vsel %vm338_vm2, %v335_v15, %v337_v11 }
  0x96   : > { %v1368_v20 = vsel %vm313_vm3, %v1324_v1, %v343_v18  ;;  %v1053_v34 = vpop.permute.xlu1 %1052  ;;  %v422_v48 = vsel %vm356_vm6, %v1044_v41, %v1045_v40  ;;  %v426_v49 = vsel %vm356_vm6, %v1045_v40, %v1044_v41  ;;  %v516_v62 = vrot.slane %v1363_v19, 4 }
  0x97   : > { %1067 = vrot.lane.b32.xlu0 %v1066_v16, %s1217_s26  ;;  %1062 = vrot.lane.b32.xlu1 %v1061_v17, %s1215_s24  ;;  %v1086_v21 = vpack.i.bf16 %v1363_v19, %v1368_v20  ;;  %v1081_v22 = vpack.i.bf16 %v1368_v20, %v1363_v19  ;;  %v1055_v44 = vunpack.i.h.bf16 %v1053_v34  ;;  %v1054_v45 = vunpack.i.l.bf16 %v1053_v34 }
  0x98   : > { %v1048_v29 = vpop.permute.xlu0 %1047  ;;  %v500_v12 = vrot.slane %v1352_v14, 4 }
  0x99   : > { %v1050_v42 = vunpack.i.h.bf16 %v1048_v29  ;;  %v1049_v43 = vunpack.i.l.bf16 %v1048_v29  ;;  %v443_v52 = vsel %vm390_vm8, %v1055_v44, %v1054_v45  ;;  %v446_v53 = vsel %vm390_vm8, %v1054_v45, %v1055_v44 }
  0x9b   : > { %1077 = vrot.lane.b32.xlu0 %v1061_v17, %s1219_s10  ;;  %1072 = vrot.lane.b32.xlu1 %v1066_v16, %s1216_s25  ;;  %v432_v50 = vsel %vm367_vm7, %v1050_v42, %v1049_v43  ;;  %v435_v51 = vsel %vm367_vm7, %v1049_v43, %v1050_v42  ;;  %v517_v16 = vrot.slane %v1368_v20, 4 }
  0x9c   : > { %v1058_v35 = vpop.permute.xlu0 %1057  ;;  %v437_v63 = vsel %vm382_vm12, %v426_v49, %v432_v50  ;;  %v436_v3 = vsel %vm381_vm13, %v422_v48, %v435_v51 }
  0x9d   : > { %v1060_v46 = vunpack.i.h.bf16 %v1058_v35  ;;  %v1059_v47 = vunpack.i.l.bf16 %v1058_v35  ;;  %v507_v23 = vrot.slane %v437_v63, 4 }
  0x9f   : > { %1087 = vrot.lane.b32.xlu0 %v1086_v21, %s1217_s26  ;;  %1082 = vrot.lane.b32.xlu1 %v1081_v22, %s1215_s24  ;;  %v451_v54 = vsel %vm399_vm9, %v1059_v47, %v1060_v46  ;;  %v455_v55 = vsel %vm399_vm9, %v1060_v46, %v1059_v47 }
  0xa0   : > { %v456_v9 = vsel %vm414_vm10, %v446_v53, %v451_v54  ;;  %v457_v11 = vsel %vm415_vm11, %v443_v52, %v455_v55 }
  0xa1   : > { %v512_v28 = vrot.slane %v456_v9, 4  ;;  %v513_v29 = vrot.slane %v457_v11, 4 }
  0xa3   : > { %483 = vrot.lane.b32.xlu0 %v1363_v19, %s1216_s25  ;;  %480 = vrot.lane.b32.xlu1 %v1368_v20, %s1216_s25 }
  0xa7   : > { %491 = vrot.lane.b32.xlu0 %v1368_v20, %s1219_s10  ;;  %489 = vrot.lane.b32.xlu1 %v1363_v19, %s1219_s10 }
  0xab   : > { %614 = vperm.xlu1 %1091, %v611_v24   ;;  %622 = vperm.xlu0 %1092, %v619_v25   ;;  %v506_v25 = vrot.slane %v436_v3, 4 }
 0x109   : > { %v1068_v56 = vpop.permute.xlu0 %1067  ;;  %v1063_v57 = vpop.permute.xlu1 %1062 }
 0x10a   : > { %v1070_v58 = vunpack.i.h.bf16 %v1068_v56  ;;  %v1069_v59 = vunpack.i.l.bf16 %v1068_v56  ;;  %v1065_v60 = vunpack.i.h.bf16 %v1063_v57  ;;  %v1064_v61 = vunpack.i.l.bf16 %v1063_v57 }
 0x10b   : > { %v526_v56 = vsel %vm520_vm14, %v1324_v1, %v513_v29 }
 0x10c   : > { %v371_v4 = vsel %vm367_vm7, %v1069_v59, %v1070_v58  ;;  %v357_v5 = vsel %vm356_vm6, %v1064_v61, %v1065_v60  ;;  %v361_v7 = vsel %vm356_vm6, %v1065_v60, %v1064_v61  ;;  %v368_v8 = vsel %vm367_vm7, %v1070_v58, %v1069_v59 }
 0x10d   : > { %v1078_v13 = vpop.permute.xlu0 %1077  ;;  %v1073_v15 = vpop.permute.xlu1 %1072  ;;  %v384_v22 = vsel %vm382_vm12, %v361_v7, %v368_v8  ;;  %v383_v24 = vsel %vm381_vm13, %v357_v5, %v371_v4  ;;  %v525_v60 = vsel %vm520_vm14, %v1320_v0, %v512_v28  ;;  %v529_v0 = vld [vmem:[%s1643_s2] sm:$0xff] }
 0x10e   : > { %v1080_v17 = vunpack.i.h.bf16 %v1078_v13  ;;  %v1079_v18 = vunpack.i.l.bf16 %v1078_v13  ;;  %v1075_v19 = vunpack.i.h.bf16 %v1073_v15  ;;  %v1074_v21 = vunpack.i.l.bf16 %v1073_v15 }
 0x10f   : > { %v522_v42 = vsel %vm520_vm14, %v384_v22, %v501_v2  ;;  %v521_v44 = vsel %vm520_vm14, %v383_v24, %v500_v12 }
 0x110   : > { %v400_v26 = vsel %vm399_vm9, %v1079_v18, %v1080_v17  ;;  %v394_v27 = vsel %vm390_vm8, %v1074_v21, %v1075_v19  ;;  %v391_v14 = vsel %vm390_vm8, %v1075_v19, %v1074_v21  ;;  %v404_v20 = vsel %vm399_vm9, %v1080_v17, %v1079_v18 }
 0x111   : > { %v1088_v30 = vpop.permute.xlu0 %1087  ;;  %v1083_v31 = vpop.permute.xlu1 %1082  ;;  %v417_v32 = vsel %vm415_vm11, %v391_v14, %v404_v20  ;;  %v416_v33 = vsel %vm414_vm10, %v394_v27, %v400_v26 }
 0x112   : > { %v1090_v34 = vunpack.i.h.bf16 %v1088_v30  ;;  %v1089_v35 = vunpack.i.l.bf16 %v1088_v30  ;;  %v1085_v40 = vunpack.i.h.bf16 %v1083_v31  ;;  %v1084_v41 = vunpack.i.l.bf16 %v1083_v31 }
 0x113   : > { %v524_v43 = vsel %vm520_vm14, %v417_v32, %v507_v23  ;;  %v523_v45 = vsel %vm520_vm14, %v416_v33, %v506_v25 }
 0x114   : > { %v474_v46 = vsel %vm367_vm7, %v1090_v34, %v1089_v35  ;;  %v477_v47 = vsel %vm367_vm7, %v1089_v35, %v1090_v34  ;;  %v464_v48 = vsel %vm356_vm6, %v1084_v41, %v1085_v40  ;;  %v468_v49 = vsel %vm356_vm6, %v1085_v40, %v1084_v41  ;;  %v853_v35 = vld [vmem:[%s1647_s6] sm:$0xff] }
 0x115   : > { %v484_v50 = vpop.permute.xlu0 %483  ;;  %v481_v51 = vpop.permute.xlu1 %480  ;;  %v965_v52 = vpack.c.bf16 %v524_v43, %v522_v42  ;;  %v967_v53 = vpack.c.bf16 %v523_v45, %v521_v44  ;;  %v479_v54 = vsel %vm382_vm12, %v468_v49, %v474_v46  ;;  %v478_v55 = vsel %vm381_vm13, %v464_v48, %v477_v47 }
 0x116   : > { %v528_v57 = vsel %vm520_vm14, %v479_v54, %v517_v16  ;;  %v527_v58 = vsel %vm520_vm14, %v478_v55, %v516_v62  ;;  %v485_v3 = vsel %vm390_vm8, %v484_v50, %v481_v51  ;;  %v488_v62 = vsel %vm390_vm8, %v481_v51, %v484_v50 }
 0x117   : > { %966 = vmatprep.subr.bf16.mxu0 %v965_v52  ;;  %v969_v59 = vpack.c.bf16 %v528_v57, %v526_v56  ;;  %v971_v61 = vpack.c.bf16 %v527_v58, %v525_v60 }
 0x118   : > { %968 = vmatpush1.bf16.msra.mxu0 %v967_v53 }
 0x119   : > { %v492_v63 = vpop.permute.xlu0 %491  ;;  %v490_v2 = vpop.permute.xlu1 %489  ;;  %970 = vmatprep.subr.bf16.mxu0 %v969_v59 }
 0x11a   : > { %v497_v4 = vsel %vm399_vm9, %v492_v63, %v490_v2  ;;  %v493_v5 = vsel %vm399_vm9, %v490_v2, %v492_v63 }
 0x11b   : > { %v499_v1 = vsel %vm415_vm11, %v485_v3, %v497_v4  ;;  %v498_v7 = vsel %vm414_vm10, %v488_v62, %v493_v5 }
 0x11c   : > { %972 = vmatpush1.bf16.msra.mxu0 %v971_v61 }
 0x11d   : > { %954 = vmatprep.subr.msk.mxu0 %vm520_vm14, %v499_v1 }
 0x120   : > { %955 = vmatpush1.msk.msra.mxu0 %vm520_vm14, %v498_v7 }
 0x121   : > { %956 = vmatmul.mubr.msk.f32.vlgmr.msra.gmra.mrb[0].mxu0 %vm530_vm15, %v529_v0 }
 0x12a   : > { %v615_v8 = vpop.permute.xlu1 %614  ;;  %v623_v11 = vpop.permute.xlu0 %622 }
 0x1f4   : > { %v606_v9 = vpop.f32.mrb[0].mxu0 }
 0x1f5   : > { %v617_v13 = vmul.f32 %v615_v8, %v606_v9  ;;  %v608_v15 = vpop.f32.mrb[1].mxu0 }
 0x1f6   : > { %v618_v12 = vmul.f32 %v615_v8, %v608_v15 }
 0x1f7   : > { %v625_v16 = vadd.f32 %v623_v11, %v617_v13 }
 0x1f8   : > { %v626_v17 = vadd.f32 %v623_v11, %v618_v12 }
 0x1f9   : > { %v1474_v18 = vmax.f32 %v625_v16, 0.0 }
 0x1fa   : > { %v1476_v19 = vmax.f32 %v626_v17, 0.0 }
 0x1fc   : > { %644 = vrot.lane.b32.xlu0 %v1476_v19, %s1213_s22  ;;  %v1093_v21 = vpack.i.bf16 %v1474_v18, %v1476_v19  ;;  %v1098_v22 = vpack.i.bf16 %v1476_v19, %v1474_v18 }
 0x1fe   : > { %1094 = vrot.lane.b32.xlu1 %v1093_v21, %s1214_s23 }
 0x200   : > { %1104 = vrot.lane.b32.xlu0 %v1093_v21, %s1217_s26 }
 0x202   : > { %642 = vrot.lane.b32.xlu1 %v1474_v18, %s1213_s22  ;;  %s1599_s22 = scalar_lea.hbm %s1649_s8, %s964_s18 }
 0x206   : > { %1099 = vrot.lane.b32.xlu1 %v1098_v22, %s1215_s24 }
 0x26e   : > { %v645_v30 = vpop.permute.xlu0 %644 }
 0x270   : > { %v1095_v23 = vpop.permute.xlu1 %1094 }
 0x271   : > { %v1097_v24 = vunpack.i.h.bf16 %v1095_v23  ;;  %v1096_v25 = vunpack.i.l.bf16 %v1095_v23 }
 0x272   : > { %v1105_v40 = vpop.permute.xlu0 %1104 }
 0x273   : > { %v1490_v26 = vsel %vm322_vm0, %v1097_v24, %v1096_v25  ;;  %v639_v27 = vsel %vm322_vm0, %v1096_v25, %v1097_v24  ;;  %v1107_v50 = vunpack.i.h.bf16 %v1105_v40  ;;  %v1106_v51 = vunpack.i.l.bf16 %v1105_v40 }
 0x274   : > { %v1496_v14 = vsel %vm310_vm1, %v1474_v18, %v639_v27  ;;  %v643_v29 = vpop.permute.xlu1 %642  ;;  %vm778_vm0 = vcmask 588800  }
 0x275   : > { %v1113_v20 = vpack.i.bf16 %v1496_v14, %v1490_v26  ;;  %v1108_v28 = vpack.i.bf16 %v1490_v26, %v1496_v14  ;;  %v650_v31 = vsel %vm338_vm2, %v645_v30, %v643_v29  ;;  %v1508_v6 = vsel %vm338_vm2, %v643_v29, %v645_v30 }
 0x276   : > { %v1513_v32 = vsel %vm313_vm3, %v1476_v19, %v650_v31  ;;  %v709_v1 = vsel %vm367_vm7, %v1107_v50, %v1106_v51  ;;  %v712_v5 = vsel %vm367_vm7, %v1106_v51, %v1107_v50 }
 0x277   : > { %1114 = vrot.lane.b32.xlu0 %v1113_v20, %s1217_s26  ;;  %1109 = vrot.lane.b32.xlu1 %v1108_v28, %s1215_s24  ;;  %v1143_v33 = vpack.i.bf16 %v1508_v6, %v1513_v32  ;;  %v1138_v34 = vpack.i.bf16 %v1513_v32, %v1508_v6 }
 0x278   : > { %v1100_v41 = vpop.permute.xlu1 %1099 }
 0x279   : > { %v1102_v42 = vunpack.i.h.bf16 %v1100_v41  ;;  %v1101_v43 = vunpack.i.l.bf16 %v1100_v41 }
 0x27b   : > { %1129 = vrot.lane.b32.xlu0 %v1108_v28, %s1219_s10  ;;  %1119 = vrot.lane.b32.xlu1 %v1113_v20, %s1216_s25  ;;  %v699_v56 = vsel %vm356_vm6, %v1101_v43, %v1102_v42  ;;  %v703_v57 = vsel %vm356_vm6, %v1102_v42, %v1101_v43 }
 0x27c   : > { %v714_v16 = vsel %vm382_vm12, %v703_v57, %v709_v1 }
 0x27f   : > { %1134 = vrot.lane.b32.xlu0 %v1098_v22, %s1219_s10  ;;  %1124 = vrot.lane.b32.xlu1 %v1093_v21, %s1216_s25  ;;  %v713_v21 = vsel %vm381_vm13, %v699_v56, %v712_v5 }
 0x283   : > { %1144 = vrot.lane.b32.xlu0 %v1143_v33, %s1217_s26  ;;  %1139 = vrot.lane.b32.xlu1 %v1138_v34, %s1215_s24  ;;  %s1153_s26 = sshll.u32 %s1221_s9, 4  ;;  %s1154_s26 = int_to_ptr.vmem [resolvable:$false] %s1153_s26 }
 0x284   : > { %s1155_s24 = scalar_lea.vmem %s1154_s26, 512 }
 0x287   : > { %760 = vrot.lane.b32.xlu0 %v1508_v6, %s1216_s25  ;;  %757 = vrot.lane.b32.xlu1 %v1513_v32, %s1216_s25 }
 0x28b   : > { %768 = vrot.lane.b32.xlu0 %v1513_v32, %s1219_s10  ;;  %766 = vrot.lane.b32.xlu1 %v1508_v6, %s1219_s10  ;;  %s296_s10 = sand.u32 1, %s1203_s28  }
 0x28c   : > { %s951_s17 = sshll.u32 %s296_s10, 4  ;;  %s874_s23 = scalar_lea.sflag [#allocation3], %s296_s10 }
 0x28d   : > { %s298_s19 = scalar_lea.vmem [#allocation2], %s951_s17 }
 0x28e   : > { %s888_s20 = sshll.u32 %s298_s19, 4  ;;  %s1601_s20 = int_to_ptr.vmem [resolvable:$true] %s888_s20 }
 0x28f   : > { %864 = vperm.xlu0 %1092, %v861_v10   ;;  %856 = vperm.xlu1 %1091, %v853_v35   ;;  %s1149_s13 = scalar_lea.vmem %s1601_s20, 256  ;;  %p1156_p0 = scmp.lt.s32.totalorder %s1601_s20, %s1154_s26 }
 0x290   : > { %p1150_p11 = scmp.ne.s32.totalorder %s1601_s20, %s1149_s13  ;;  %p1157_p1 = scmp.lt.s32.totalorder %s1155_s24, %s1149_s13 }
 0x292   : > { %p1151_p12 = pnand %p1150_p11, %p1305_p5  ;;  %p1158_p2 = por %p1157_p1, %p1156_p0 }
 0x294   : > { %p1152_p13 = pneg %p1151_p12 }
 0x296   : > { %p1159_p3 = pnand %p1158_p2, %p1152_p13 }
 0x2e9   : > { %v1115_v44 = vpop.permute.xlu0 %1114  ;;  %v1110_v45 = vpop.permute.xlu1 %1109 }
 0x2ea   : > { %v1117_v46 = vunpack.i.h.bf16 %v1115_v44  ;;  %v1116_v47 = vunpack.i.l.bf16 %v1115_v44  ;;  %v1112_v48 = vunpack.i.h.bf16 %v1110_v45  ;;  %v1111_v49 = vunpack.i.l.bf16 %v1110_v45 }
 0x2ec   : > { %v663_v52 = vsel %vm356_vm6, %v1112_v48, %v1111_v49  ;;  %v669_v53 = vsel %vm367_vm7, %v1117_v46, %v1116_v47  ;;  %v659_v54 = vsel %vm356_vm6, %v1111_v49, %v1112_v48  ;;  %v672_v55 = vsel %vm367_vm7, %v1116_v47, %v1117_v46 }
 0x2ed   : > { %v1130_v58 = vpop.permute.xlu0 %1129  ;;  %v1120_v59 = vpop.permute.xlu1 %1119  ;;  %v674_v60 = vsel %vm382_vm12, %v663_v52, %v669_v53  ;;  %v673_v61 = vsel %vm381_vm13, %v659_v54, %v672_v55 }
 0x2ee   : > { %v1132_v63 = vunpack.i.h.bf16 %v1130_v58  ;;  %v1131_v2 = vunpack.i.l.bf16 %v1130_v58  ;;  %v1122_v3 = vunpack.i.h.bf16 %v1120_v59  ;;  %v1121_v4 = vunpack.i.l.bf16 %v1120_v59 }
 0x2ef   : > { %v973_v62 = vpack.c.bf16 %v1490_v26, %v674_v60  ;;  %v975_v0 = vpack.c.bf16 %v1496_v14, %v673_v61 }
 0x2f0   : > { %v688_v7 = vsel %vm399_vm9, %v1131_v2, %v1132_v63  ;;  %v692_v8 = vsel %vm399_vm9, %v1132_v63, %v1131_v2  ;;  %v680_v9 = vsel %vm390_vm8, %v1122_v3, %v1121_v4  ;;  %v683_v11 = vsel %vm390_vm8, %v1121_v4, %v1122_v3 }
 0x2f1   : > { %974 = vmatprep.subr.bf16.mxu1 %v973_v62  ;;  %v1135_v13 = vpop.permute.xlu0 %1134  ;;  %v1125_v15 = vpop.permute.xlu1 %1124  ;;  %v694_v12 = vsel %vm415_vm11, %v680_v9, %v692_v8  ;;  %v693_v17 = vsel %vm414_vm10, %v683_v11, %v688_v7 }
 0x2f2   : > { %v1137_v22 = vunpack.i.h.bf16 %v1135_v13  ;;  %v1136_v23 = vunpack.i.l.bf16 %v1135_v13  ;;  %v1127_v24 = vunpack.i.h.bf16 %v1125_v15  ;;  %v1126_v25 = vunpack.i.l.bf16 %v1125_v15  ;;  %976 = vmatpush1.bf16.msra.mxu1 %v975_v0 }
 0x2f3   : > { %v977_v26 = vpack.c.bf16 %v714_v16, %v694_v12  ;;  %v979_v27 = vpack.c.bf16 %v713_v21, %v693_v17 }
 0x2f4   : > { %v728_v14 = vsel %vm399_vm9, %v1136_v23, %v1137_v22  ;;  %v732_v20 = vsel %vm399_vm9, %v1137_v22, %v1136_v23  ;;  %v720_v28 = vsel %vm390_vm8, %v1127_v24, %v1126_v25  ;;  %v723_v29 = vsel %vm390_vm8, %v1126_v25, %v1127_v24 }
 0x2f5   : > { %978 = vmatprep.subr.bf16.mxu1 %v977_v26  ;;  %v1145_v30 = vpop.permute.xlu0 %1144  ;;  %v1140_v31 = vpop.permute.xlu1 %1139  ;;  %v734_v33 = vsel %vm415_vm11, %v720_v28, %v732_v20  ;;  %v733_v34 = vsel %vm414_vm10, %v723_v29, %v728_v14 }
 0x2f6   : > { %v1147_v10 = vunpack.i.h.bf16 %v1145_v30  ;;  %v1146_v35 = vunpack.i.l.bf16 %v1145_v30  ;;  %v1142_v40 = vunpack.i.h.bf16 %v1140_v31  ;;  %v1141_v41 = vunpack.i.l.bf16 %v1140_v31  ;;  %980 = vmatpush1.bf16.msra.mxu1 %v979_v27 }
 0x2f7   : > { %v981_v42 = vpack.c.bf16 %v734_v33, %v1476_v19  ;;  %v983_v43 = vpack.c.bf16 %v733_v34, %v1474_v18 }
 0x2f8   : > { %v751_v44 = vsel %vm367_vm7, %v1147_v10, %v1146_v35  ;;  %v754_v45 = vsel %vm367_vm7, %v1146_v35, %v1147_v10  ;;  %v741_v46 = vsel %vm356_vm6, %v1141_v41, %v1142_v40  ;;  %v745_v47 = vsel %vm356_vm6, %v1142_v40, %v1141_v41 }
 0x2f9   : > { %982 = vmatprep.subr.bf16.mxu1 %v981_v42  ;;  %v761_v48 = vpop.permute.xlu0 %760  ;;  %v758_v49 = vpop.permute.xlu1 %757  ;;  %v756_v50 = vsel %vm382_vm12, %v745_v47, %v751_v44  ;;  %v755_v51 = vsel %vm381_vm13, %v741_v46, %v754_v45 }
 0x2fa   : > { %984 = vmatpush1.bf16.msra.mxu1 %v983_v43  ;;  %v985_v18 = vpack.c.bf16 %v1513_v32, %v756_v50  ;;  %v987_v19 = vpack.c.bf16 %v1508_v6, %v755_v51  ;;  %v762_v54 = vsel %vm390_vm8, %v761_v48, %v758_v49  ;;  %v765_v55 = vsel %vm390_vm8, %v758_v49, %v761_v48  ;;  %v777_v32 = vld [vmem:[%s1646_s5] sm:$0xff] }
 0x2fc   : > { %986 = vmatprep.subr.bf16.mxu1 %v985_v18 }
 0x2fd   : > { %v769_v52 = vpop.permute.xlu0 %768  ;;  %v767_v53 = vpop.permute.xlu1 %766 }
 0x2fe   : > { %v770_v56 = vsel %vm399_vm9, %v767_v53, %v769_v52  ;;  %v774_v38 = vsel %vm399_vm9, %v769_v52, %v767_v53  ;;  %988 = vmatpush1.bf16.msra.mxu1 %v987_v19 }
 0x2ff   : > { %v776_v39 = vsel %vm415_vm11, %v762_v54, %v774_v38  ;;  %v775_v6 = vsel %vm414_vm10, %v765_v55, %v770_v56 }
 0x300   : > { %798 = vmatprep.subr.mxu1 %v776_v39 }
 0x302   : > { %799 = vmatpush1.msra.mxu1 %v775_v6 }
 0x303   : > { %957 = vmatmul.mubr.msk.f32.vlgmr.msra.gmra.mrb[0].mxu1 %vm778_vm0, %v777_v32 }
 0x30e   : > { %v857_v57 = vpop.permute.xlu1 %856  ;;  %v865_v37 = vpop.permute.xlu0 %864 }
 0x3d6   : > { %v848_v58 = vpop.f32.mrb[0].mxu1 }
 0x3d7   : > { %v859_v59 = vmul.f32 %v857_v57, %v848_v58  ;;  %v850_v60 = vpop.f32.mrb[1].mxu1 }
 0x3d8   : > { %v860_v61 = vmul.f32 %v857_v57, %v850_v60 }
 0x3d9   : > { %v867_v36 = vadd.f32 %v865_v37, %v859_v59 }
 0x3da   : > { %v868_v63 = vadd.f32 %v865_v37, %v860_v61 }
 0x3db   : > { %v869_v2 = vmax.f32 %v867_v36, 0.0 }
 0x3dc   : > { %v870_v3 = vmax.f32 %v868_v63, 0.0 }
 0x3dd   : > { %871 = vst [vmem:[%s298_s19] sm:$0xff] %v869_v2 }
 0x3de   : > { %872 = vst [vmem:[%s298_s19 + $0x8] sm:$0xff] %v870_v3 }
 0x3df   : > { %1162 = shalt.err (!%p1159_p3)
}
 0x3e0   : > { %s1163_s25 = scalar_lea.hbm %s1599_s22, 256  ;;  %s1167_s18 = scalar_lea.hbm %s1649_s8, 512 }
 0x3e1   : > { %p1164_p4 = scmp.ne.s32.totalorder %s1599_s22, %s1163_s25  ;;  %p1168_p9 = scmp.lt.u32.totalorder %s1599_s22, %s1649_s8 }
 0x3e2   : > { %p1169_p10 = scmp.lt.u32.totalorder %s1167_s18, %s1163_s25  ;;  %p1171_p12 = scmp.lt.u32.totalorder %s1163_s25, %s1599_s22 }
 0x3e3   : > { %p1165_p7 = pnand %p1164_p4, %p1305_p5 }
 0x3e4   : > { %p1170_p11 = por %p1169_p10, %p1168_p9 }
 0x3e5   : > { %p1166_p8 = pneg %p1165_p7 }
 0x3e6   : > { %p1172_p13 = por %p1171_p12, %p1170_p11 }
 0x3e8   : > { %p1173_p0 = pnand %p1172_p13, %p1166_p8 }
 0x3ea   : > { %1176 = shalt.err (!%p1173_p0)
}
 0x3eb   : > { %989 = dma.vmem_to_hbm [thread:$0]  (%p1305_p5), %s1601_s20, 256, %s1599_s22, %s874_s23  }
 0x3ec PF: > { %p995_p1 = scmp.ge.s32.totalorder %s1211_s30, 2  ;;  %s900_s12 = sand.u32 1, %s1199_s27  }
 0x3ed   : > { %s901_s13 = scalar_lea.sflag [#allocation3], %s900_s12 }
 0x3ee   : > { %p992_p2 = pnand %p995_p1, %p1309_p6 }
 0x3f0   : > { %1194 = dma.done.wait (!%p992_p2), %s901_s13, 256  }
 0x3f1   : > { %1196 = vsyncadd (!%p992_p2), %s901_s13, 4294967040  ;;  %p18_p3 = scmp.ge.s32.totalorder %s1292_s11, 4   ;;  %s1652_s27 = smov %s1203_s28 }
 0x3f2   : > { %s1653_s28 = smov %s1207_s29  ;;  %s1654_s29 = smov %s1303_s14 }
 0x3f3   : > { %s1655_s30 = smov %s1292_s11  ;;  %20 = sbr.rel (!%p18_p3) target bundleno = 3 (0x3), region = 87 }
 0x3fa   :  { %906 = vsyncpa [#allocation3], 1 }
 0x3fb   :  { %908 = vsyncpa [#allocation3 + $0x1], 1 }

</bundles_post_ra>
